<compile_context>
chip_gen: v6e
topology: v6e:2x2x1
jax: 0.10.0
libtpu: 0.0.40
codegen_flags: <defaults>
</compile_context>

<pallas_src>
import math
import jax
import jax.numpy as jnp
from jax.experimental import pallas as pl
from jax.experimental.pallas import tpu as pltpu

D_MODEL = 256       # module global d_model
FF_HIDDEN = 1024    # FeedForward default hidden_size


def _round_up(x, m):
    return ((x + m - 1) // m) * m


# ---------------- fused FeedForward kernel ----------------

def _ff_kernel(x_ref, w1_ref, b1_ref, w2_ref, b2_ref, o_ref):
    # x:(TM, D) in caller dtype, w1:(D, H) bf16, b1:(1, H) f32,
    # w2:(H, D) bf16, b2:(1, D) f32, o:(TM, D) in caller dtype.
    H = w1_ref.shape[1]
    HC = 256 if H % 256 == 0 else H        # hidden-dim chunk (MXU-friendly)
    NC = H // HC

    x_bf = x_ref[...].astype(jnp.bfloat16)
    acc = jnp.zeros((x_ref.shape[0], o_ref.shape[1]), jnp.float32)

    # Unrolled chunked loop over the hidden dim: matmul1(chunk) -> bias/ReLU/
    # cast (VPU) -> matmul2(chunk) accumulated in f32.  Chunk c's VPU work
    # overlaps chunk c+1's MXU work; no full (TM, H) intermediate is stored.
    for c in range(NC):
        lo = c * HC
        h = jnp.dot(x_bf, w1_ref[:, lo:lo + HC],
                    preferred_element_type=jnp.float32)
        h = jnp.maximum(h + b1_ref[:, lo:lo + HC], 0.0)   # bias + ReLU in f32
        # Dropout == identity (eval-mode semantics).
        acc = acc + jnp.dot(h.astype(jnp.bfloat16), w2_ref[lo:lo + HC, :],
                            preferred_element_type=jnp.float32)

    o_ref[...] = (acc + b2_ref[...]).astype(o_ref.dtype)


def feed_forward(x, w1, b1, w2, b2, *, tm=1024):
    """x: (..., D_MODEL); returns (..., D_MODEL) in x's dtype.

    `tm` is the row-tile target (multiple of 256).  1024 is safe on all of
    v5e / v6e / v7x; v6e (128 MiB VMEM) can take tm=2048-4096.
    """
    D, H = w1.shape
    orig_shape = x.shape
    orig_dtype = x.dtype
    x2d = x.reshape(-1, D)
    M = x2d.shape[0]

    if M <= 512:
        # Small problem: a single tile.  Pad only this tiny tile (negligible),
        # rounded to 16 rows for bf16 sublane packing.
        TM = _round_up(M, 16)
        Mpad = TM
        if Mpad != M:
            x2d = jnp.pad(x2d, ((0, Mpad - M), (0, 0)))
        grid_m = 1
    else:
        # Large problem: MXU-aligned tiles (multiple of 256), at least 2 grid
        # programs so both v7x TensorCores get work.  No whole-array pad:
        # Pallas handles the ragged last block (OOB rows are discarded; rows
        # are computed independently so valid outputs are unaffected).
        TM = min(max(_round_up(tm, 256), 256),
                 _round_up(pl.cdiv(M, 2), 256))
        Mpad = M
        grid_m = pl.cdiv(M, TM)

    out = pl.pallas_call(
        _ff_kernel,
        out_shape=jax.ShapeDtypeStruct((Mpad, D), orig_dtype),
        grid=(grid_m,),
        in_specs=[
            # activations: tiled over rows, double-buffered by default
            pl.BlockSpec((TM, D), lambda i: (i, 0)),
            # weights / biases: resident (constant index_map) -> single buffer
            pl.BlockSpec((D, H), lambda i: (0, 0), pipeline_mode=pl.Buffered(1)),
            pl.BlockSpec((1, H), lambda i: (0, 0), pipeline_mode=pl.Buffered(1)),
            pl.BlockSpec((H, D), lambda i: (0, 0), pipeline_mode=pl.Buffered(1)),
            pl.BlockSpec((1, D), lambda i: (0, 0), pipeline_mode=pl.Buffered(1)),
        ],
        out_specs=pl.BlockSpec((TM, D), lambda i: (i, 0)),
        compiler_params=pltpu.CompilerParams(
            dimension_semantics=("parallel",),       # shard rows across TCs
            vmem_limit_bytes=64 * 1024 * 1024),      # big tiles OK on v5e/v7x
    )(x2d,
      w1.astype(jnp.bfloat16),
      b1.reshape(1, H).astype(jnp.float32),
      w2.astype(jnp.bfloat16),
      b2.reshape(1, D).astype(jnp.float32))

    if Mpad != M:
        out = out[:M]
    return out.reshape(orig_shape)


# ------- pure-JAX reference (same bf16-in / f32-acc numerics) -------

def feed_forward_ref(x, w1, b1, w2, b2):
    D, H = w1.shape
    x2d = x.reshape(-1, D)
    h = jnp.dot(x2d.astype(jnp.bfloat16), w1.astype(jnp.bfloat16),
                preferred_element_type=jnp.float32) + b1.astype(jnp.float32)
    h = jnp.maximum(h, 0.0)
    y = jnp.dot(h.astype(jnp.bfloat16), w2.astype(jnp.bfloat16),
                preferred_element_type=jnp.float32) + b2.astype(jnp.float32)
    return y.astype(x.dtype).reshape(x.shape)


# ---------------- deterministic init (nn.Linear-style) ----------------

def init_params(key, d_model=D_MODEL, hidden=FF_HIDDEN):
    k1, k2, k3, k4 = jax.random.split(key, 4)
    lim1 = 1.0 / math.sqrt(d_model)
    lim2 = 1.0 / math.sqrt(hidden)
    w1 = jax.random.uniform(k1, (d_model, hidden), jnp.float32, -lim1, lim1)
    b1 = jax.random.uniform(k2, (hidden,), jnp.float32, -lim1, lim1)
    w2 = jax.random.uniform(k3, (hidden, d_model), jnp.float32, -lim2, lim2)
    b2 = jax.random.uniform(k4, (d_model,), jnp.float32, -lim2, lim2)
    return w1, b1, w2, b2


if __name__ == "__main__":
    key = jax.random.PRNGKey(0)
    k_param, k_x = jax.random.split(key)

    batch, seq = 2, 8
    w1, b1, w2, b2 = init_params(k_param)
    x = jax.random.normal(k_x, (batch, seq, D_MODEL), jnp.float32)

    fwd = jax.jit(feed_forward)
    out = fwd(x, w1, b1, w2, b2)
    jax.block_until_ready(out)

    ref = jax.jit(feed_forward_ref)(x, w1, b1, w2, b2)
    jax.block_until_ready(ref)

    assert out.shape == (batch, seq, D_MODEL)
    assert jnp.all(jnp.isfinite(out))
    assert jnp.allclose(out, ref, rtol=2e-2, atol=2e-2), (
        float(jnp.max(jnp.abs(out - ref))))
    print("KERNEL_OK")
</pallas_src>

<mosaic_0001>
module attributes {stable_mosaic.version = 11 : i64} {
  func.func @_ff_kernel(%arg0: i32, %arg1: memref<16x256xf32, #tpu.memory_space<vmem>>, %arg2: memref<256x1024xbf16, #tpu.memory_space<vmem>>, %arg3: memref<1x1024xf32, #tpu.memory_space<vmem>>, %arg4: memref<1024x256xbf16, #tpu.memory_space<vmem>>, %arg5: memref<1x256xf32, #tpu.memory_space<vmem>>, %arg6: memref<16x256xf32, #tpu.memory_space<vmem>>) attributes {dimension_semantics = [#tpu.dimension_semantics<parallel>], iteration_bounds = array<i64: 1>, scalar_prefetch = 0 : i64, scratch_operands = 0 : i64, tpu.core_type = #tpu.core_type<tc>, window_params = [{transform_indices = @transform_0, window_bounds = array<i64: 16, 256>}, {pipeline_mode = #tpu.pipeline_mode<synchronous>, transform_indices = @transform_1, window_bounds = array<i64: 256, 1024>}, {pipeline_mode = #tpu.pipeline_mode<synchronous>, transform_indices = @transform_2, window_bounds = array<i64: 1, 1024>}, {pipeline_mode = #tpu.pipeline_mode<synchronous>, transform_indices = @transform_3, window_bounds = array<i64: 1024, 256>}, {pipeline_mode = #tpu.pipeline_mode<synchronous>, transform_indices = @transform_4, window_bounds = array<i64: 1, 256>}, {transform_indices = @transform_5, window_bounds = array<i64: 16, 256>}]} {
    %c0 = arith.constant 0 : index
    %c0_0 = arith.constant 0 : index
    %0 = vector.load %arg1[%c0, %c0_0] : memref<16x256xf32, #tpu.memory_space<vmem>>, vector<16x256xf32>
    %1 = arith.truncf %0 : vector<16x256xf32> to vector<16x256xbf16>
    %cst = arith.constant 0.000000e+00 : f32
    %2 = vector.broadcast %cst : f32 to vector<16x256xf32>
    %c0_1 = arith.constant 0 : index
    %c0_2 = arith.constant 0 : index
    %3 = vector.load %arg2[%c0_1, %c0_2] : memref<256x1024xbf16, #tpu.memory_space<vmem>>, vector<256x256xbf16>
    %cst_3 = arith.constant dense<0.000000e+00> : vector<16x256xf32>
    %4 = tpu.matmul %1, %3, %cst_3 {dimension_numbers = #tpu.dot_dimension_numbers<[1], [0], [0], [1], [0, 0, 1, 1], [], []>} : vector<16x256xbf16>, vector<256x256xbf16>, vector<16x256xf32> -> vector<16x256xf32>
    %c0_4 = arith.constant 0 : index
    %c0_5 = arith.constant 0 : index
    %5 = vector.load %arg3[%c0_4, %c0_5] : memref<1x1024xf32, #tpu.memory_space<vmem>>, vector<1x256xf32>
    %6 = vector.broadcast %5 : vector<1x256xf32> to vector<16x256xf32>
    %7 = arith.addf %4, %6 : vector<16x256xf32>
    %cst_6 = arith.constant 0.000000e+00 : f32
    %8 = vector.broadcast %cst_6 : f32 to vector<16x256xf32>
    %9 = arith.maximumf %7, %8 : vector<16x256xf32>
    %10 = arith.truncf %9 : vector<16x256xf32> to vector<16x256xbf16>
    %c0_7 = arith.constant 0 : index
    %c0_8 = arith.constant 0 : index
    %11 = vector.load %arg4[%c0_7, %c0_8] : memref<1024x256xbf16, #tpu.memory_space<vmem>>, vector<256x256xbf16>
    %cst_9 = arith.constant dense<0.000000e+00> : vector<16x256xf32>
    %12 = tpu.matmul %10, %11, %cst_9 {dimension_numbers = #tpu.dot_dimension_numbers<[1], [0], [0], [1], [0, 0, 1, 1], [], []>} : vector<16x256xbf16>, vector<256x256xbf16>, vector<16x256xf32> -> vector<16x256xf32>
    %13 = arith.addf %2, %12 : vector<16x256xf32>
    %c0_10 = arith.constant 0 : index
    %c256 = arith.constant 256 : index
    %14 = vector.load %arg2[%c0_10, %c256] : memref<256x1024xbf16, #tpu.memory_space<vmem>>, vector<256x256xbf16>
    %cst_11 = arith.constant dense<0.000000e+00> : vector<16x256xf32>
    %15 = tpu.matmul %1, %14, %cst_11 {dimension_numbers = #tpu.dot_dimension_numbers<[1], [0], [0], [1], [0, 0, 1, 1], [], []>} : vector<16x256xbf16>, vector<256x256xbf16>, vector<16x256xf32> -> vector<16x256xf32>
    %c0_12 = arith.constant 0 : index
    %c256_13 = arith.constant 256 : index
    %16 = vector.load %arg3[%c0_12, %c256_13] : memref<1x1024xf32, #tpu.memory_space<vmem>>, vector<1x256xf32>
    %17 = vector.broadcast %16 : vector<1x256xf32> to vector<16x256xf32>
    %18 = arith.addf %15, %17 : vector<16x256xf32>
    %cst_14 = arith.constant 0.000000e+00 : f32
    %19 = vector.broadcast %cst_14 : f32 to vector<16x256xf32>
    %20 = arith.maximumf %18, %19 : vector<16x256xf32>
    %21 = arith.truncf %20 : vector<16x256xf32> to vector<16x256xbf16>
    %c256_15 = arith.constant 256 : index
    %c0_16 = arith.constant 0 : index
    %22 = vector.load %arg4[%c256_15, %c0_16] : memref<1024x256xbf16, #tpu.memory_space<vmem>>, vector<256x256xbf16>
    %cst_17 = arith.constant dense<0.000000e+00> : vector<16x256xf32>
    %23 = tpu.matmul %21, %22, %cst_17 {dimension_numbers = #tpu.dot_dimension_numbers<[1], [0], [0], [1], [0, 0, 1, 1], [], []>} : vector<16x256xbf16>, vector<256x256xbf16>, vector<16x256xf32> -> vector<16x256xf32>
    %24 = arith.addf %13, %23 : vector<16x256xf32>
    %c0_18 = arith.constant 0 : index
    %c512 = arith.constant 512 : index
    %25 = vector.load %arg2[%c0_18, %c512] : memref<256x1024xbf16, #tpu.memory_space<vmem>>, vector<256x256xbf16>
    %cst_19 = arith.constant dense<0.000000e+00> : vector<16x256xf32>
    %26 = tpu.matmul %1, %25, %cst_19 {dimension_numbers = #tpu.dot_dimension_numbers<[1], [0], [0], [1], [0, 0, 1, 1], [], []>} : vector<16x256xbf16>, vector<256x256xbf16>, vector<16x256xf32> -> vector<16x256xf32>
    %c0_20 = arith.constant 0 : index
    %c512_21 = arith.constant 512 : index
    %27 = vector.load %arg3[%c0_20, %c512_21] : memref<1x1024xf32, #tpu.memory_space<vmem>>, vector<1x256xf32>
    %28 = vector.broadcast %27 : vector<1x256xf32> to vector<16x256xf32>
    %29 = arith.addf %26, %28 : vector<16x256xf32>
    %cst_22 = arith.constant 0.000000e+00 : f32
    %30 = vector.broadcast %cst_22 : f32 to vector<16x256xf32>
    %31 = arith.maximumf %29, %30 : vector<16x256xf32>
    %32 = arith.truncf %31 : vector<16x256xf32> to vector<16x256xbf16>
    %c512_23 = arith.constant 512 : index
    %c0_24 = arith.constant 0 : index
    %33 = vector.load %arg4[%c512_23, %c0_24] : memref<1024x256xbf16, #tpu.memory_space<vmem>>, vector<256x256xbf16>
    %cst_25 = arith.constant dense<0.000000e+00> : vector<16x256xf32>
    %34 = tpu.matmul %32, %33, %cst_25 {dimension_numbers = #tpu.dot_dimension_numbers<[1], [0], [0], [1], [0, 0, 1, 1], [], []>} : vector<16x256xbf16>, vector<256x256xbf16>, vector<16x256xf32> -> vector<16x256xf32>
    %35 = arith.addf %24, %34 : vector<16x256xf32>
    %c0_26 = arith.constant 0 : index
    %c768 = arith.constant 768 : index
    %36 = vector.load %arg2[%c0_26, %c768] : memref<256x1024xbf16, #tpu.memory_space<vmem>>, vector<256x256xbf16>
    %cst_27 = arith.constant dense<0.000000e+00> : vector<16x256xf32>
    %37 = tpu.matmul %1, %36, %cst_27 {dimension_numbers = #tpu.dot_dimension_numbers<[1], [0], [0], [1], [0, 0, 1, 1], [], []>} : vector<16x256xbf16>, vector<256x256xbf16>, vector<16x256xf32> -> vector<16x256xf32>
    %c0_28 = arith.constant 0 : index
    %c768_29 = arith.constant 768 : index
    %38 = vector.load %arg3[%c0_28, %c768_29] : memref<1x1024xf32, #tpu.memory_space<vmem>>, vector<1x256xf32>
    %39 = vector.broadcast %38 : vector<1x256xf32> to vector<16x256xf32>
    %40 = arith.addf %37, %39 : vector<16x256xf32>
    %cst_30 = arith.constant 0.000000e+00 : f32
    %41 = vector.broadcast %cst_30 : f32 to vector<16x256xf32>
    %42 = arith.maximumf %40, %41 : vector<16x256xf32>
    %43 = arith.truncf %42 : vector<16x256xf32> to vector<16x256xbf16>
    %c768_31 = arith.constant 768 : index
    %c0_32 = arith.constant 0 : index
    %44 = vector.load %arg4[%c768_31, %c0_32] : memref<1024x256xbf16, #tpu.memory_space<vmem>>, vector<256x256xbf16>
    %cst_33 = arith.constant dense<0.000000e+00> : vector<16x256xf32>
    %45 = tpu.matmul %43, %44, %cst_33 {dimension_numbers = #tpu.dot_dimension_numbers<[1], [0], [0], [1], [0, 0, 1, 1], [], []>} : vector<16x256xbf16>, vector<256x256xbf16>, vector<16x256xf32> -> vector<16x256xf32>
    %46 = arith.addf %35, %45 : vector<16x256xf32>
    %c0_34 = arith.constant 0 : index
    %c0_35 = arith.constant 0 : index
    %47 = vector.load %arg5[%c0_34, %c0_35] : memref<1x256xf32, #tpu.memory_space<vmem>>, vector<1x256xf32>
    %48 = vector.broadcast %47 : vector<1x256xf32> to vector<16x256xf32>
    %49 = arith.addf %46, %48 : vector<16x256xf32>
    %c0_36 = arith.constant 0 : index
    %c0_37 = arith.constant 0 : index
    %50 = vector.load %arg6[%c0_36, %c0_37] : memref<16x256xf32, #tpu.memory_space<vmem>>, vector<16x256xf32>
    tpu.vector_store %arg6[%c0_36, %c0_37], %49 {strides = array<i32>} : memref<16x256xf32, #tpu.memory_space<vmem>>, vector<16x256xf32>,
    return
  }
  func.func @transform_0(%arg0: i32) -> (i32, i32) {
    %c0_i32 = arith.constant 0 : i32
    %c0_i32_0 = arith.constant 0 : i32
    return %arg0, %c0_i32 : i32, i32
  }
  func.func @transform_1(%arg0: i32) -> (i32, i32) {
    %c0_i32 = arith.constant 0 : i32
    %c0_i32_0 = arith.constant 0 : i32
    %c0_i32_1 = arith.constant 0 : i32
    return %c0_i32, %c0_i32_0 : i32, i32
  }
  func.func @transform_2(%arg0: i32) -> (i32, i32) {
    %c0_i32 = arith.constant 0 : i32
    %c0_i32_0 = arith.constant 0 : i32
    %c0_i32_1 = arith.constant 0 : i32
    return %c0_i32, %c0_i32_0 : i32, i32
  }
  func.func @transform_3(%arg0: i32) -> (i32, i32) {
    %c0_i32 = arith.constant 0 : i32
    %c0_i32_0 = arith.constant 0 : i32
    %c0_i32_1 = arith.constant 0 : i32
    return %c0_i32, %c0_i32_0 : i32, i32
  }
  func.func @transform_4(%arg0: i32) -> (i32, i32) {
    %c0_i32 = arith.constant 0 : i32
    %c0_i32_0 = arith.constant 0 : i32
    %c0_i32_1 = arith.constant 0 : i32
    return %c0_i32, %c0_i32_0 : i32, i32
  }
  func.func @transform_5(%arg0: i32) -> (i32, i32) {
    %c0_i32 = arith.constant 0 : i32
    %c0_i32_0 = arith.constant 0 : i32
    return %arg0, %c0_i32 : i32, i32
  }
}

</mosaic_0001>

<bundles_post_ra>
// kernel: feed_forward.1
= control target key start
LH: loop header
LB: loop body
LE: loop exit
PB: predicated region body
PF: predicated region fallthrough
CT: control target
= control target key end

     0   :  { %s3365_s0 = inlined_call_operand.vmem [shape: f32[16,256], index: 0, kind: input, shape index: {}]   ;;  %s3366_s1 = inlined_call_operand.vmem [shape: bf16[256,1024], index: 1, kind: input, shape index: {}]   ;;  %s3367_s2 = inlined_call_operand.vmem [shape: f32[1,1024], index: 2, kind: input, shape index: {}]   ;;  %s3368_s3 = inlined_call_operand.vmem [shape: bf16[1024,256], index: 3, kind: input, shape index: {}]   ;;  %s3369_s4 = inlined_call_operand.vmem [shape: f32[1,256], index: 4, kind: input, shape index: {}]   ;;  %s3370_s5 = inlined_call_operand.hbm [shape: f32[16,256], index: 5, kind: output, shape index: {}]  }
   0x1   :  { %v41_v0 = vld [vmem:[%s3366_s1 + $0x1c0] sm:$0xff]  ;;  %v326_v2 = vld [vmem:[%s3366_s1 + $0x1c8] sm:$0xff]  ;;  %v24_v54 = vld [vmem:[%s3365_s0 + $0x18] sm:$0xff] }
   0x2   :  { %v42_v1 = vld [vmem:[%s3366_s1 + $0x1e0] sm:$0xff]  ;;  %v327_v4 = vld [vmem:[%s3366_s1 + $0x1e8] sm:$0xff] }
   0x3   :  { %v2038_v3 = vcombine.high %v41_v0, %v42_v1  ;;  %v2037_v5 = vcombine.low %v41_v0, %v42_v1  ;;  %v39_v6 = vld [vmem:[%s3366_s1 + $0x180] sm:$0xff]  ;;  %v2070_v8 = vcombine.high %v326_v2, %v327_v4  ;;  %v2069_v9 = vcombine.low %v326_v2, %v327_v4  ;;  %v324_v11 = vld [vmem:[%s3366_s1 + $0x188] sm:$0xff] }
   0x4   :  { %v40_v7 = vld [vmem:[%s3366_s1 + $0x1a0] sm:$0xff]  ;;  %v325_v12 = vld [vmem:[%s3366_s1 + $0x1a8] sm:$0xff] }
   0x5   :  { %v2036_v10 = vcombine.high %v39_v6, %v40_v7  ;;  %v37_v13 = vld [vmem:[%s3366_s1 + $0x140] sm:$0xff]  ;;  %231 = vmatprep.subr.bf16.mxu0 %v2038_v3  ;;  %v2068_v14 = vcombine.high %v324_v11, %v325_v12  ;;  %v322_v16 = vld [vmem:[%s3366_s1 + $0x148] sm:$0xff]  ;;  %516 = vmatprep.subr.bf16.mxu1 %v2070_v8  ;;  %v2035_v18 = vcombine.low %v39_v6, %v40_v7 }
   0x6   :  { %v38_v15 = vld [vmem:[%s3366_s1 + $0x160] sm:$0xff]  ;;  %v323_v17 = vld [vmem:[%s3366_s1 + $0x168] sm:$0xff]  ;;  %232 = vmatpush1.bf16.msra.mxu0 %v2037_v5  ;;  %517 = vmatpush1.bf16.msra.mxu1 %v2069_v9  ;;  %v2067_v19 = vcombine.low %v324_v11, %v325_v12 }
   0x7   :  { %233 = vmatprep.subr.bf16.mxu0 %v2036_v10  ;;  %v2034_v20 = vcombine.high %v37_v13, %v38_v15  ;;  %518 = vmatprep.subr.bf16.mxu1 %v2068_v14  ;;  %v2066_v21 = vcombine.high %v322_v16, %v323_v17  ;;  %v35_v22 = vld [vmem:[%s3366_s1 + $0x100] sm:$0xff]  ;;  %v320_v24 = vld [vmem:[%s3366_s1 + $0x108] sm:$0xff]  ;;  %v2033_v26 = vcombine.low %v37_v13, %v38_v15 }
   0x8   :  { %v36_v23 = vld [vmem:[%s3366_s1 + $0x120] sm:$0xff]  ;;  %v321_v25 = vld [vmem:[%s3366_s1 + $0x128] sm:$0xff]  ;;  %v2065_v27 = vcombine.low %v322_v16, %v323_v17 }
   0x9   :  { %v2032_v28 = vcombine.high %v35_v22, %v36_v23  ;;  %v2064_v29 = vcombine.high %v320_v24, %v321_v25  ;;  %v33_v30 = vld [vmem:[%s3366_s1 + $0xc0] sm:$0xff]  ;;  %v318_v32 = vld [vmem:[%s3366_s1 + $0xc8] sm:$0xff]  ;;  %v2031_v34 = vcombine.low %v35_v22, %v36_v23  ;;  %v2063_v35 = vcombine.low %v320_v24, %v321_v25 }
   0xa   :  { %234 = vmatpush1.bf16.msra.mxu0 %v2035_v18  ;;  %519 = vmatpush1.bf16.msra.mxu1 %v2067_v19  ;;  %v34_v31 = vld [vmem:[%s3366_s1 + $0xe0] sm:$0xff]  ;;  %v319_v33 = vld [vmem:[%s3366_s1 + $0xe8] sm:$0xff] }
   0xb   :  { %235 = vmatprep.subr.bf16.mxu0 %v2034_v20  ;;  %520 = vmatprep.subr.bf16.mxu1 %v2066_v21  ;;  %v2030_v36 = vcombine.high %v33_v30, %v34_v31  ;;  %v2062_v37 = vcombine.high %v318_v32, %v319_v33  ;;  %v31_v38 = vld [vmem:[%s3366_s1 + $0x80] sm:$0xff]  ;;  %v316_v40 = vld [vmem:[%s3366_s1 + $0x88] sm:$0xff]  ;;  %v2029_v42 = vcombine.low %v33_v30, %v34_v31 }
   0xc   :  { %v32_v39 = vld [vmem:[%s3366_s1 + $0xa0] sm:$0xff]  ;;  %v317_v41 = vld [vmem:[%s3366_s1 + $0xa8] sm:$0xff]  ;;  %v2061_v43 = vcombine.low %v318_v32, %v319_v33 }
   0xd   :  { %v2028_v44 = vcombine.high %v31_v38, %v32_v39  ;;  %v2060_v45 = vcombine.high %v316_v40, %v317_v41  ;;  %v29_v46 = vld [vmem:[%s3366_s1 + $0x40] sm:$0xff]  ;;  %v314_v48 = vld [vmem:[%s3366_s1 + $0x48] sm:$0xff]  ;;  %v2027_v50 = vcombine.low %v31_v38, %v32_v39  ;;  %v2059_v51 = vcombine.low %v316_v40, %v317_v41 }
   0xe   :  { %236 = vmatpush1.bf16.msra.mxu0 %v2033_v26  ;;  %521 = vmatpush1.bf16.msra.mxu1 %v2065_v27  ;;  %v30_v47 = vld [vmem:[%s3366_s1 + $0x60] sm:$0xff]  ;;  %v315_v49 = vld [vmem:[%s3366_s1 + $0x68] sm:$0xff] }
   0xf   :  { %237 = vmatprep.subr.bf16.mxu0 %v2032_v28  ;;  %522 = vmatprep.subr.bf16.mxu1 %v2064_v29  ;;  %v2026_v52 = vcombine.high %v29_v46, %v30_v47  ;;  %v22_v53 = vld [vmem:[%s3365_s0 + $0x8] sm:$0xff]  ;;  %v2058_v55 = vcombine.high %v314_v48, %v315_v49  ;;  %v27_v56 = vld [vmem:[%s3366_s1] sm:$0xff]  ;;  %v2025_v61 = vcombine.low %v29_v46, %v30_v47 }
  0x10   :  { %v28_v57 = vld [vmem:[%s3366_s1 + $0x20] sm:$0xff]  ;;  %v2625_v58 = vpack.c.bf16 %v24_v54, %v22_v53  ;;  %v312_v59 = vld [vmem:[%s3366_s1 + $0x8] sm:$0xff]  ;;  %v2057_v62 = vcombine.low %v314_v48, %v315_v49 }
  0x11   :  { %v313_v60 = vld [vmem:[%s3366_s1 + $0x28] sm:$0xff]  ;;  %v2024_v63 = vcombine.high %v27_v56, %v28_v57  ;;  %v57_v1 = vld [vmem:[%s3366_s1 + $0x3c0] sm:$0xff]  ;;  %v2023_v5 = vcombine.low %v27_v56, %v28_v57 }
  0x12   :  { %238 = vmatpush1.bf16.msra.mxu0 %v2031_v34  ;;  %523 = vmatpush1.bf16.msra.mxu1 %v2063_v35  ;;  %v2056_v0 = vcombine.high %v312_v59, %v313_v60  ;;  %v58_v2 = vld [vmem:[%s3366_s1 + $0x3e0] sm:$0xff]  ;;  %v342_v3 = vld [vmem:[%s3366_s1 + $0x3c8] sm:$0xff]  ;;  %v2055_v6 = vcombine.low %v312_v59, %v313_v60 }
  0x13   :  { %239 = vmatprep.subr.bf16.mxu0 %v2030_v36  ;;  %524 = vmatprep.subr.bf16.mxu1 %v2062_v37  ;;  %v343_v4 = vld [vmem:[%s3366_s1 + $0x3e8] sm:$0xff]  ;;  %v2054_v7 = vcombine.high %v57_v1, %v58_v2  ;;  %v55_v9 = vld [vmem:[%s3366_s1 + $0x380] sm:$0xff]  ;;  %v2053_v13 = vcombine.low %v57_v1, %v58_v2 }
  0x14   :  { %263 = vmatprep.mubr.bf16.mxu0 %v2625_v58  ;;  %548 = vmatprep.mubr.bf16.mxu1 %v2625_v58  ;;  %v2086_v8 = vcombine.high %v342_v3, %v343_v4  ;;  %v56_v10 = vld [vmem:[%s3366_s1 + $0x3a0] sm:$0xff]  ;;  %v340_v11 = vld [vmem:[%s3366_s1 + $0x388] sm:$0xff]  ;;  %v2085_v14 = vcombine.low %v342_v3, %v343_v4  ;;  %v23_v3 = vld [vmem:[%s3365_s0 + $0x10] sm:$0xff] }
  0x15   :  { %v341_v12 = vld [vmem:[%s3366_s1 + $0x3a8] sm:$0xff]  ;;  %v2052_v15 = vcombine.high %v55_v9, %v56_v10  ;;  %v53_v17 = vld [vmem:[%s3366_s1 + $0x340] sm:$0xff]  ;;  %v2051_v21 = vcombine.low %v55_v9, %v56_v10  ;;  %v2284_v4 = vld [vmem:[%s3368_s3 + $0x174] ss:$8 sps:$4 sm:$0xff]  }
  0x16   :  { %240 = vmatpush1.bf16.msra.mxu0 %v2029_v42  ;;  %525 = vmatpush1.bf16.msra.mxu1 %v2061_v43  ;;  %v2084_v16 = vcombine.high %v340_v11, %v341_v12  ;;  %v54_v18 = vld [vmem:[%s3366_s1 + $0x360] sm:$0xff]  ;;  %v338_v19 = vld [vmem:[%s3366_s1 + $0x348] sm:$0xff]  ;;  %v2083_v22 = vcombine.low %v340_v11, %v341_v12  ;;  %v2285_v10 = vld [vmem:[%s3368_s3 + $0x70] ss:$8 sps:$4 sm:$0xff]  }
  0x17   :  { %241 = vmatprep.subr.bf16.mxu0 %v2028_v44  ;;  %526 = vmatprep.subr.bf16.mxu1 %v2060_v45  ;;  %v339_v20 = vld [vmem:[%s3366_s1 + $0x368] sm:$0xff]  ;;  %v2050_v23 = vcombine.high %v53_v17, %v54_v18  ;;  %v51_v25 = vld [vmem:[%s3366_s1 + $0x300] sm:$0xff]  ;;  %v2049_v29 = vcombine.low %v53_v17, %v54_v18  ;;  %v2294_v17 = vld [vmem:[%s3368_s3 + $0x150] ss:$8 sps:$4 sm:$0xff]  }
  0x18   :  { %v2082_v24 = vcombine.high %v338_v19, %v339_v20  ;;  %v52_v26 = vld [vmem:[%s3366_s1 + $0x320] sm:$0xff]  ;;  %v336_v27 = vld [vmem:[%s3366_s1 + $0x308] sm:$0xff]  ;;  %v2081_v30 = vcombine.low %v338_v19, %v339_v20  ;;  %v2297_v18 = vld [vmem:[%s3368_s3 + $0x50] ss:$8 sps:$4 sm:$0xff]  }
  0x19   :  { %v337_v28 = vld [vmem:[%s3366_s1 + $0x328] sm:$0xff]  ;;  %v2048_v31 = vcombine.high %v51_v25, %v52_v26  ;;  %v49_v33 = vld [vmem:[%s3366_s1 + $0x2c0] sm:$0xff]  ;;  %v2047_v37 = vcombine.low %v51_v25, %v52_v26  ;;  %v2306_v25 = vld [vmem:[%s3368_s3 + $0x130] ss:$8 sps:$4 sm:$0xff]  }
  0x1a   :  { %242 = vmatpush1.bf16.msra.mxu0 %v2027_v50  ;;  %527 = vmatpush1.bf16.msra.mxu1 %v2059_v51  ;;  %v2080_v32 = vcombine.high %v336_v27, %v337_v28  ;;  %v50_v34 = vld [vmem:[%s3366_s1 + $0x2e0] sm:$0xff]  ;;  %v334_v35 = vld [vmem:[%s3366_s1 + $0x2c8] sm:$0xff]  ;;  %v2079_v38 = vcombine.low %v336_v27, %v337_v28  ;;  %v2309_v26 = vld [vmem:[%s3368_s3 + $0x30] ss:$8 sps:$4 sm:$0xff]  }
  0x1b   :  { %243 = vmatprep.subr.bf16.mxu0 %v2026_v52  ;;  %528 = vmatprep.subr.bf16.mxu1 %v2058_v55  ;;  %v335_v36 = vld [vmem:[%s3366_s1 + $0x2e8] sm:$0xff]  ;;  %v2046_v39 = vcombine.high %v49_v33, %v50_v34  ;;  %v47_v41 = vld [vmem:[%s3366_s1 + $0x280] sm:$0xff]  ;;  %v2045_v45 = vcombine.low %v49_v33, %v50_v34 }
  0x1c   :  { %v2078_v40 = vcombine.high %v334_v35, %v335_v36  ;;  %v48_v42 = vld [vmem:[%s3366_s1 + $0x2a0] sm:$0xff]  ;;  %v332_v43 = vld [vmem:[%s3366_s1 + $0x288] sm:$0xff]  ;;  %v2077_v46 = vcombine.low %v334_v35, %v335_v36 }
  0x1d   :  { %v333_v44 = vld [vmem:[%s3366_s1 + $0x2a8] sm:$0xff]  ;;  %v2044_v47 = vcombine.high %v47_v41, %v48_v42  ;;  %v45_v49 = vld [vmem:[%s3366_s1 + $0x240] sm:$0xff]  ;;  %v2043_v53 = vcombine.low %v47_v41, %v48_v42 }
  0x1e   :  { %244 = vmatpush1.bf16.msra.mxu0 %v2025_v61  ;;  %529 = vmatpush1.bf16.msra.mxu1 %v2057_v62  ;;  %v2076_v48 = vcombine.high %v332_v43, %v333_v44  ;;  %v46_v50 = vld [vmem:[%s3366_s1 + $0x260] sm:$0xff]  ;;  %v330_v51 = vld [vmem:[%s3366_s1 + $0x248] sm:$0xff]  ;;  %v2075_v54 = vcombine.low %v332_v43, %v333_v44 }
  0x1f   :  { %245 = vmatprep.subr.bf16.mxu0 %v2024_v63  ;;  %530 = vmatprep.subr.bf16.mxu1 %v2056_v0  ;;  %v331_v52 = vld [vmem:[%s3366_s1 + $0x268] sm:$0xff]  ;;  %v2042_v55 = vcombine.high %v45_v49, %v46_v50  ;;  %v43_v57 = vld [vmem:[%s3366_s1 + $0x200] sm:$0xff]  ;;  %v2041_v62 = vcombine.low %v45_v49, %v46_v50 }
  0x20   :  { %v2074_v56 = vcombine.high %v330_v51, %v331_v52  ;;  %v44_v59 = vld [vmem:[%s3366_s1 + $0x220] sm:$0xff]  ;;  %v328_v60 = vld [vmem:[%s3366_s1 + $0x208] sm:$0xff]  ;;  %v2073_v63 = vcombine.low %v330_v51, %v331_v52 }
  0x21   :  { %v329_v61 = vld [vmem:[%s3366_s1 + $0x228] sm:$0xff]  ;;  %v2040_v0 = vcombine.high %v43_v57, %v44_v59  ;;  %v21_v2 = vld [vmem:[%s3365_s0] sm:$0xff] }
  0x22   :  { %246 = vmatpush1.bf16.msra.mxu0 %v2023_v5  ;;  %531 = vmatpush1.bf16.msra.mxu1 %v2055_v6  ;;  %v2072_v1 = vcombine.high %v328_v60, %v329_v61  ;;  %v2039_v5 = vcombine.low %v43_v57, %v44_v59  ;;  %v2287_v6 = vld [vmem:[%s3368_s3 + $0x74] ss:$8 sps:$4 sm:$0xff]   ;;  %v2746_v9 = vpack.c.bf16 %v23_v3, %v21_v2  ;;  %v2290_v11 = vld [vmem:[%s3368_s3 + $0x164] ss:$8 sps:$4 sm:$0xff]  }
  0x23   :  { %247 = vmatprep.subr.bf16.mxu0 %v2054_v7  ;;  %532 = vmatprep.subr.bf16.mxu1 %v2086_v8  ;;  %v2071_v7 = vcombine.low %v328_v60, %v329_v61  ;;  %v2282_v8 = vld [vmem:[%s3368_s3 + $0x170] ss:$8 sps:$4 sm:$0xff]   ;;  %v2293_v12 = vld [vmem:[%s3368_s3 + $0x64] ss:$8 sps:$4 sm:$0xff]  }
  0x24   :  { %v2302_v19 = vld [vmem:[%s3368_s3 + $0x144] ss:$8 sps:$4 sm:$0xff]  }
  0x25   :  { %v2305_v20 = vld [vmem:[%s3368_s3 + $0x44] ss:$8 sps:$4 sm:$0xff]  }
  0x26   :  { %248 = vmatpush2.bf16.msra.mxu0 %v2053_v13  ;;  %533 = vmatpush2.bf16.msra.mxu1 %v2085_v14  ;;  %v2288_v13 = vld [vmem:[%s3368_s3 + $0x160] ss:$8 sps:$4 sm:$0xff]   ;;  %v2314_v27 = vld [vmem:[%s3368_s3 + $0x124] ss:$8 sps:$4 sm:$0xff]  }
  0x27   :  { %249 = vmatprep.subr.bf16.mxu0 %v2052_v15  ;;  %534 = vmatprep.subr.bf16.mxu1 %v2084_v16  ;;  %v2291_v14 = vld [vmem:[%s3368_s3 + $0x60] ss:$8 sps:$4 sm:$0xff]   ;;  %v2296_v15 = vld [vmem:[%s3368_s3 + $0x154] ss:$8 sps:$4 sm:$0xff]   ;;  %v2317_v28 = vld [vmem:[%s3368_s3 + $0x24] ss:$8 sps:$4 sm:$0xff]  }
  0x28   :  { %v2299_v16 = vld [vmem:[%s3368_s3 + $0x54] ss:$8 sps:$4 sm:$0xff]  }
  0x2a   :  { %250 = vmatpush2.bf16.msra.mxu0 %v2051_v21  ;;  %535 = vmatpush2.bf16.msra.mxu1 %v2083_v22  ;;  %v2300_v21 = vld [vmem:[%s3368_s3 + $0x140] ss:$8 sps:$4 sm:$0xff]  }
  0x2b   :  { %251 = vmatprep.subr.bf16.mxu0 %v2050_v23  ;;  %536 = vmatprep.subr.bf16.mxu1 %v2082_v24  ;;  %v2303_v22 = vld [vmem:[%s3368_s3 + $0x40] ss:$8 sps:$4 sm:$0xff]   ;;  %v2308_v23 = vld [vmem:[%s3368_s3 + $0x134] ss:$8 sps:$4 sm:$0xff]  }
  0x2c   :  { %v2311_v24 = vld [vmem:[%s3368_s3 + $0x34] ss:$8 sps:$4 sm:$0xff]  }
  0x2e   :  { %252 = vmatpush2.bf16.msra.mxu0 %v2049_v29  ;;  %537 = vmatpush2.bf16.msra.mxu1 %v2081_v30 }
  0x2f   :  { %253 = vmatprep.subr.bf16.mxu0 %v2048_v31  ;;  %538 = vmatprep.subr.bf16.mxu1 %v2080_v32 }
  0x32   :  { %254 = vmatpush2.bf16.msra.mxu0 %v2047_v37  ;;  %539 = vmatpush2.bf16.msra.mxu1 %v2079_v38 }
  0x33   :  { %255 = vmatprep.subr.bf16.mxu0 %v2046_v39  ;;  %540 = vmatprep.subr.bf16.mxu1 %v2078_v40 }
  0x36   :  { %256 = vmatpush2.bf16.msra.mxu0 %v2045_v45  ;;  %541 = vmatpush2.bf16.msra.mxu1 %v2077_v46 }
  0x37   :  { %257 = vmatprep.subr.bf16.mxu0 %v2044_v47  ;;  %542 = vmatprep.subr.bf16.mxu1 %v2076_v48 }
  0x3a   :  { %258 = vmatpush2.bf16.msra.mxu0 %v2043_v53  ;;  %543 = vmatpush2.bf16.msra.mxu1 %v2075_v54 }
  0x3b   :  { %259 = vmatprep.subr.bf16.mxu0 %v2042_v55  ;;  %544 = vmatprep.subr.bf16.mxu1 %v2074_v56 }
  0x3e   :  { %260 = vmatpush2.bf16.msra.mxu0 %v2041_v62  ;;  %545 = vmatpush2.bf16.msra.mxu1 %v2073_v63 }
  0x3f   :  { %261 = vmatprep.subr.bf16.mxu0 %v2040_v0  ;;  %546 = vmatprep.subr.bf16.mxu1 %v2072_v1 }
  0x42   :  { %262 = vmatpush2.bf16.msra.mxu0 %v2039_v5  ;;  %547 = vmatpush2.bf16.msra.mxu1 %v2071_v7 }
  0x43   :  { %757 = vmatprep.subr.bf16.mxu0 %v2284_v4  ;;  %960 = vmatprep.subr.bf16.mxu1 %v2287_v6 }
  0x45   :  { %264 = vmatmul.mubr.bf16.vlgmr.msra.gmra.mxu0 %v2746_v9  ;;  %549 = vmatmul.mubr.bf16.vlgmr.msra.gmra.mxu1 %v2746_v9 }
  0x46   :  { %758 = vmatpush1.bf16.msra.mxu0 %v2282_v8  ;;  %961 = vmatpush1.bf16.msra.mxu1 %v2285_v10 }
  0x47   :  { %759 = vmatprep.subr.bf16.mxu0 %v2290_v11  ;;  %962 = vmatprep.subr.bf16.mxu1 %v2293_v12 }
  0x4a   :  { %760 = vmatpush1.bf16.msra.mxu0 %v2288_v13  ;;  %963 = vmatpush1.bf16.msra.mxu1 %v2291_v14 }
  0x4b   :  { %761 = vmatprep.subr.bf16.mxu0 %v2296_v15  ;;  %964 = vmatprep.subr.bf16.mxu1 %v2299_v16 }
  0x4e   :  { %762 = vmatpush1.bf16.msra.mxu0 %v2294_v17  ;;  %965 = vmatpush1.bf16.msra.mxu1 %v2297_v18 }
  0x4f   :  { %763 = vmatprep.subr.bf16.mxu0 %v2302_v19  ;;  %966 = vmatprep.subr.bf16.mxu1 %v2305_v20 }
  0x52   :  { %764 = vmatpush1.bf16.msra.mxu0 %v2300_v21  ;;  %967 = vmatpush1.bf16.msra.mxu1 %v2303_v22 }
  0x53   :  { %765 = vmatprep.subr.bf16.mxu0 %v2308_v23  ;;  %968 = vmatprep.subr.bf16.mxu1 %v2311_v24 }
  0x54   :  { %10 = vsyncpa [#allocation3], 0  ;;  %v2312_v29 = vld [vmem:[%s3368_s3 + $0x120] ss:$8 sps:$4 sm:$0xff]   ;;  %v2320_v31 = vld [vmem:[%s3368_s3 + $0x114] ss:$8 sps:$4 sm:$0xff]   ;;  %v61_v13 = vlaneseq }
  0x55   :  { %v2315_v30 = vld [vmem:[%s3368_s3 + $0x20] ss:$8 sps:$4 sm:$0xff]   ;;  %v2323_v32 = vld [vmem:[%s3368_s3 + $0x14] ss:$8 sps:$4 sm:$0xff]   ;;  %v2318_v33 = vld [vmem:[%s3368_s3 + $0x110] ss:$8 sps:$4 sm:$0xff]  }
  0x56   :  { %766 = vmatpush1.bf16.msra.mxu0 %v2306_v25  ;;  %969 = vmatpush1.bf16.msra.mxu1 %v2309_v26  ;;  %v2321_v34 = vld [vmem:[%s3368_s3 + $0x10] ss:$8 sps:$4 sm:$0xff]   ;;  %v2326_v35 = vld [vmem:[%s3368_s3 + $0x104] ss:$8 sps:$4 sm:$0xff]   ;;  %v2324_v37 = vld [vmem:[%s3368_s3 + $0x100] ss:$8 sps:$4 sm:$0xff]  }
  0x57   :  { %767 = vmatprep.subr.bf16.mxu0 %v2314_v27  ;;  %970 = vmatprep.subr.bf16.mxu1 %v2317_v28  ;;  %v2329_v36 = vld [vmem:[%s3368_s3 + $0x4] ss:$8 sps:$4 sm:$0xff]   ;;  %v2327_v38 = vld [vmem:[%s3368_s3] ss:$8 sps:$4 sm:$0xff]   ;;  %v2332_v39 = vld [vmem:[%s3368_s3 + $0x1f4] ss:$8 sps:$4 sm:$0xff]  }
  0x58   :  { %v2335_v40 = vld [vmem:[%s3368_s3 + $0xf4] ss:$8 sps:$4 sm:$0xff]   ;;  %v2330_v41 = vld [vmem:[%s3368_s3 + $0x1f0] ss:$8 sps:$4 sm:$0xff]   ;;  %v2338_v43 = vld [vmem:[%s3368_s3 + $0x1e4] ss:$8 sps:$4 sm:$0xff]  }
  0x59   :  { %v2333_v42 = vld [vmem:[%s3368_s3 + $0xf0] ss:$8 sps:$4 sm:$0xff]   ;;  %v2341_v44 = vld [vmem:[%s3368_s3 + $0xe4] ss:$8 sps:$4 sm:$0xff]   ;;  %v2336_v45 = vld [vmem:[%s3368_s3 + $0x1e0] ss:$8 sps:$4 sm:$0xff]  }
  0x5a   :  { %768 = vmatpush1.bf16.msra.mxu0 %v2312_v29  ;;  %971 = vmatpush1.bf16.msra.mxu1 %v2315_v30  ;;  %v2339_v46 = vld [vmem:[%s3368_s3 + $0xe0] ss:$8 sps:$4 sm:$0xff]   ;;  %v2344_v47 = vld [vmem:[%s3368_s3 + $0x1d4] ss:$8 sps:$4 sm:$0xff]   ;;  %v2342_v49 = vld [vmem:[%s3368_s3 + $0x1d0] ss:$8 sps:$4 sm:$0xff]  }
  0x5b   :  { %769 = vmatprep.subr.bf16.mxu0 %v2320_v31  ;;  %972 = vmatprep.subr.bf16.mxu1 %v2323_v32  ;;  %v2347_v48 = vld [vmem:[%s3368_s3 + $0xd4] ss:$8 sps:$4 sm:$0xff]   ;;  %v2345_v50 = vld [vmem:[%s3368_s3 + $0xd0] ss:$8 sps:$4 sm:$0xff]   ;;  %v2350_v51 = vld [vmem:[%s3368_s3 + $0x1c4] ss:$8 sps:$4 sm:$0xff]  }
  0x5c   :  { %v2353_v52 = vld [vmem:[%s3368_s3 + $0xc4] ss:$8 sps:$4 sm:$0xff]   ;;  %v2348_v53 = vld [vmem:[%s3368_s3 + $0x1c0] ss:$8 sps:$4 sm:$0xff]   ;;  %v2356_v55 = vld [vmem:[%s3368_s3 + $0x1b4] ss:$8 sps:$4 sm:$0xff]  }
  0x5d   :  { %v2351_v54 = vld [vmem:[%s3368_s3 + $0xc0] ss:$8 sps:$4 sm:$0xff]   ;;  %v2359_v56 = vld [vmem:[%s3368_s3 + $0xb4] ss:$8 sps:$4 sm:$0xff]   ;;  %v2354_v57 = vld [vmem:[%s3368_s3 + $0x1b0] ss:$8 sps:$4 sm:$0xff]  }
  0x5e   :  { %770 = vmatpush1.bf16.msra.mxu0 %v2318_v33  ;;  %973 = vmatpush1.bf16.msra.mxu1 %v2321_v34  ;;  %v2357_v59 = vld [vmem:[%s3368_s3 + $0xb0] ss:$8 sps:$4 sm:$0xff]   ;;  %v2362_v60 = vld [vmem:[%s3368_s3 + $0x1a4] ss:$8 sps:$4 sm:$0xff]   ;;  %v2360_v61 = vld [vmem:[%s3368_s3 + $0x1a0] ss:$8 sps:$4 sm:$0xff]  }
  0x5f   :  { %771 = vmatprep.subr.bf16.mxu0 %v2326_v35  ;;  %974 = vmatprep.subr.bf16.mxu1 %v2329_v36  ;;  %v2365_v62 = vld [vmem:[%s3368_s3 + $0xa4] ss:$8 sps:$4 sm:$0xff]   ;;  %v2363_v63 = vld [vmem:[%s3368_s3 + $0xa0] ss:$8 sps:$4 sm:$0xff]   ;;  %v2368_v0 = vld [vmem:[%s3368_s3 + $0x194] ss:$8 sps:$4 sm:$0xff]  }
  0x60   :  { %v2366_v1 = vld [vmem:[%s3368_s3 + $0x190] ss:$8 sps:$4 sm:$0xff]   ;;  %v2371_v2 = vld [vmem:[%s3368_s3 + $0x94] ss:$8 sps:$4 sm:$0xff]   ;;  %v2374_v4 = vld [vmem:[%s3368_s3 + $0x184] ss:$8 sps:$4 sm:$0xff]  }
  0x61   :  { %v2369_v3 = vld [vmem:[%s3368_s3 + $0x90] ss:$8 sps:$4 sm:$0xff]   ;;  %v2372_v5 = vld [vmem:[%s3368_s3 + $0x180] ss:$8 sps:$4 sm:$0xff]   ;;  %v2377_v6 = vld [vmem:[%s3368_s3 + $0x84] ss:$8 sps:$4 sm:$0xff]  }
  0x62   :  { %772 = vmatpush1.bf16.msra.mxu0 %v2324_v37  ;;  %975 = vmatpush1.bf16.msra.mxu1 %v2327_v38  ;;  %v2375_v7 = vld [vmem:[%s3368_s3 + $0x80] ss:$8 sps:$4 sm:$0xff]   ;;  %v1017_v8 = vld [vmem:[%s3366_s1 + $0x1d0] sm:$0xff]  ;;  %v62_v14 = vshrl.u32 %v61_v13, 7 }
  0x63   :  { %773 = vmatprep.subr.bf16.mxu0 %v2332_v39  ;;  %976 = vmatprep.subr.bf16.mxu1 %v2335_v40  ;;  %v1018_v10 = vld [vmem:[%s3366_s1 + $0x1f0] sm:$0xff]  ;;  %v59_v15 = vld [vmem:[%s3367_s2] sm:$0x3]  ;;  %v344_v21 = vld [vmem:[%s3367_s2 + $0x2] sm:$0x3] }
  0x64   :  { %v2166_v11 = vcombine.high %v1017_v8, %v1018_v10  ;;  %v2165_v12 = vcombine.low %v1017_v8, %v1018_v10  ;;  %v2942_v16 = vsub.s32 0, %v62_v14  ;;  %v2944_v17 = vsub.s32 1, %v62_v14  ;;  %v1006_v8 = vld [vmem:[%s3366_s1 + $0x70] sm:$0xff] }
  0x65   :  { %v1004_v13 = vld [vmem:[%s3366_s1 + $0x30] sm:$0xff] }
  0x66   :  { %774 = vmatpush2.bf16.msra.mxu0 %v2330_v41  ;;  %977 = vmatpush2.bf16.msra.mxu1 %v2333_v42  ;;  %v64_v18 = vrot.slane %v59_v15, %v2942_v16  ;;  %v68_v19 = vrot.slane %v59_v15, %v2944_v17  ;;  %v353_v25 = vrot.slane %v344_v21, %v2944_v17 }
  0x67   :  { %775 = vmatprep.subr.bf16.mxu0 %v2338_v43  ;;  %978 = vmatprep.subr.bf16.mxu1 %v2341_v44  ;;  %v349_v26 = vrot.slane %v344_v21, %v2942_v16 }
  0x6a   :  { %776 = vmatpush2.bf16.msra.mxu0 %v2336_v45  ;;  %979 = vmatpush2.bf16.msra.mxu1 %v2339_v46 }
  0x6b   :  { %777 = vmatprep.subr.bf16.mxu0 %v2344_v47  ;;  %980 = vmatprep.subr.bf16.mxu1 %v2347_v48  ;;  %v1015_v47 = vld [vmem:[%s3366_s1 + $0x190] sm:$0xff] }
  0x6c   :  { %v1016_v48 = vld [vmem:[%s3366_s1 + $0x1b0] sm:$0xff] }
  0x6e   :  { %778 = vmatpush2.bf16.msra.mxu0 %v2342_v49  ;;  %981 = vmatpush2.bf16.msra.mxu1 %v2345_v50 }
  0x6f   :  { %779 = vmatprep.subr.bf16.mxu0 %v2350_v51  ;;  %982 = vmatprep.subr.bf16.mxu1 %v2353_v52 }
  0x72   :  { %780 = vmatpush2.bf16.msra.mxu0 %v2348_v53  ;;  %983 = vmatpush2.bf16.msra.mxu1 %v2351_v54  ;;  %v2164_v53 = vcombine.high %v1015_v47, %v1016_v48  ;;  %v1013_v54 = vld [vmem:[%s3366_s1 + $0x150] sm:$0xff] }
  0x73   :  { %781 = vmatprep.subr.bf16.mxu0 %v2356_v55  ;;  %984 = vmatprep.subr.bf16.mxu1 %v2359_v56  ;;  %v1014_v55 = vld [vmem:[%s3366_s1 + $0x170] sm:$0xff]  ;;  %v2163_v56 = vcombine.low %v1015_v47, %v1016_v48 }
  0x74   :  { %v1020_v47 = vld [vmem:[%s3366_s1 + $0x230] sm:$0xff] }
  0x76   :  { %782 = vmatpush2.bf16.msra.mxu0 %v2354_v57  ;;  %985 = vmatpush2.bf16.msra.mxu1 %v2357_v59  ;;  %v2162_v57 = vcombine.high %v1013_v54, %v1014_v55  ;;  %v1011_v59 = vld [vmem:[%s3366_s1 + $0x110] sm:$0xff] }
  0x77   :  { %783 = vmatprep.subr.bf16.mxu0 %v2362_v60  ;;  %986 = vmatprep.subr.bf16.mxu1 %v2365_v62  ;;  %v1012_v60 = vld [vmem:[%s3366_s1 + $0x130] sm:$0xff] }
  0x78   :  { %v2160_v62 = vcombine.high %v1011_v59, %v1012_v60 }
  0x7a   :  { %784 = vmatpush2.bf16.msra.mxu0 %v2360_v61  ;;  %987 = vmatpush2.bf16.msra.mxu1 %v2363_v63  ;;  %v2161_v61 = vcombine.low %v1013_v54, %v1014_v55  ;;  %v1009_v63 = vld [vmem:[%s3366_s1 + $0xd0] sm:$0xff]  ;;  %v1507_v54 = vld [vmem:[%s3366_s1 + $0x198] sm:$0xff] }
  0x7b   :  { %785 = vmatprep.subr.bf16.mxu0 %v2368_v0  ;;  %988 = vmatprep.subr.bf16.mxu1 %v2371_v2  ;;  %v1010_v0 = vld [vmem:[%s3366_s1 + $0xf0] sm:$0xff]  ;;  %v1508_v55 = vld [vmem:[%s3366_s1 + $0x1b8] sm:$0xff] }
  0x7c   :  { %v2158_v2 = vcombine.high %v1009_v63, %v1010_v0 }
  0x7e   :  { %786 = vmatpush2.bf16.msra.mxu0 %v2366_v1  ;;  %989 = vmatpush2.bf16.msra.mxu1 %v2369_v3  ;;  %v2159_v1 = vcombine.low %v1011_v59, %v1012_v60  ;;  %v1007_v3 = vld [vmem:[%s3366_s1 + $0x90] sm:$0xff]  ;;  %v1505_v59 = vld [vmem:[%s3366_s1 + $0x158] sm:$0xff] }
  0x7f   :  { %787 = vmatprep.subr.bf16.mxu0 %v2374_v4  ;;  %990 = vmatprep.subr.bf16.mxu1 %v2377_v6  ;;  %v1008_v4 = vld [vmem:[%s3366_s1 + $0xb0] sm:$0xff]  ;;  %v1506_v60 = vld [vmem:[%s3366_s1 + $0x178] sm:$0xff] }
  0x80   :  { %v2156_v6 = vcombine.high %v1007_v3, %v1008_v4  ;;  %v2155_v10 = vcombine.low %v1007_v3, %v1008_v4  ;;  %v1501_v3 = vld [vmem:[%s3366_s1 + $0xd8] sm:$0xff] }
  0x81   :  { %v2378_v4 = vld [vmem:[%s3368_s3 + $0x270] ss:$8 sps:$4 sm:$0xff]  }
  0x82   :  { %788 = vmatpush2.bf16.msra.mxu0 %v2372_v5  ;;  %991 = vmatpush2.bf16.msra.mxu1 %v2375_v7  ;;  %v2157_v5 = vcombine.low %v1009_v63, %v1010_v0  ;;  %v1005_v7 = vld [vmem:[%s3366_s1 + $0x50] sm:$0xff]  ;;  %v1503_v63 = vld [vmem:[%s3366_s1 + $0x118] sm:$0xff] }
  0x83   :  { %1207 = vmatprep.subr.bf16.mxu0 %v2166_v11  ;;  %v2154_v11 = vcombine.high %v1005_v7, %v1006_v8  ;;  %v2153_v14 = vcombine.low %v1005_v7, %v1006_v8  ;;  %v1504_v0 = vld [vmem:[%s3366_s1 + $0x138] sm:$0xff] }
  0x84   :  { %v2223_v7 = vcombine.low %v1503_v63, %v1504_v0 }
 0x105   :  { %v265_v20 = vpop.f32.mrf.mxu0  ;;  %v550_v22 = vpop.f32.mrf.mxu1 }
 0x106   :  { %v266_v23 = vadd.f32 %v265_v20, %v64_v18  ;;  %v551_v36 = vadd.f32 %v550_v22, %v349_v26  ;;  %v1031_v22 = vld [vmem:[%s3366_s1 + $0x390] sm:$0xff] }
 0x107   :  { %v267_v24 = vpop.f32.mrf.mxu0  ;;  %v552_v28 = vpop.f32.mrf.mxu1 }
 0x108   :  { %v268_v27 = vadd.f32 %v267_v24, %v68_v19  ;;  %v274_v32 = vmax.f32 %v266_v23, 0.0  ;;  %v553_v33 = vadd.f32 %v552_v28, %v353_v25  ;;  %v559_v49 = vmax.f32 %v551_v36, 0.0  ;;  %v1032_v23 = vld [vmem:[%s3366_s1 + $0x3b0] sm:$0xff] }
 0x109   :  { %v269_v29 = vpop.f32.mrf.mxu0  ;;  %v554_v31 = vpop.f32.mrf.mxu1  ;;  %v2179_v28 = vcombine.low %v1031_v22, %v1032_v23 }
 0x10a   :  { %v270_v30 = vadd.f32 %v269_v29, %v64_v18  ;;  %v555_v34 = vadd.f32 %v554_v31, %v349_v26  ;;  %v275_v37 = vmax.f32 %v268_v27, 0.0  ;;  %v560_v44 = vmax.f32 %v553_v33, 0.0  ;;  %v1033_v18 = vld [vmem:[%s3366_s1 + $0x3d0] sm:$0xff] }
 0x10b   :  { %v271_v35 = vpop.f32.mrf.mxu0  ;;  %v556_v40 = vpop.f32.mrf.mxu1  ;;  %v1029_v26 = vld [vmem:[%s3366_s1 + $0x350] sm:$0xff] }
 0x10c   :  { %v276_v38 = vmax.f32 %v270_v30, 0.0  ;;  %v272_v39 = vadd.f32 %v271_v35, %v68_v19  ;;  %v557_v41 = vadd.f32 %v556_v40, %v353_v25  ;;  %v561_v42 = vmax.f32 %v555_v34, 0.0  ;;  %v1034_v19 = vld [vmem:[%s3366_s1 + $0x3f0] sm:$0xff] }
 0x10d   :  { %v2182_v21 = vcombine.high %v1033_v18, %v1034_v19  ;;  %v2181_v24 = vcombine.low %v1033_v18, %v1034_v19  ;;  %v2180_v25 = vcombine.high %v1031_v22, %v1032_v23  ;;  %v1030_v27 = vld [vmem:[%s3366_s1 + $0x370] sm:$0xff]  ;;  %v1497_v19 = vld [vmem:[%s3366_s1 + $0x58] sm:$0xff] }
 0x10e   :  { %v277_v43 = vmax.f32 %v272_v39, 0.0  ;;  %v278_v45 = vpack.c.bf16 %v276_v38, %v274_v32  ;;  %v562_v46 = vmax.f32 %v557_v41, 0.0  ;;  %v563_v52 = vpack.c.bf16 %v561_v42, %v559_v49  ;;  %v1027_v30 = vld [vmem:[%s3366_s1 + $0x310] sm:$0xff] }
 0x10f   :  { %v2178_v29 = vcombine.high %v1029_v26, %v1030_v27  ;;  %v1028_v31 = vld [vmem:[%s3366_s1 + $0x330] sm:$0xff]  ;;  %v2177_v32 = vcombine.low %v1029_v26, %v1030_v27  ;;  %v1496_v26 = vld [vmem:[%s3366_s1 + $0x38] sm:$0xff] }
 0x110   :  { %v279_v50 = vpack.c.bf16 %v277_v43, %v275_v37  ;;  %v564_v51 = vpack.c.bf16 %v562_v46, %v560_v44  ;;  %v2176_v33 = vcombine.high %v1027_v30, %v1028_v31  ;;  %v1025_v34 = vld [vmem:[%s3366_s1 + $0x2d0] sm:$0xff]  ;;  %v2175_v36 = vcombine.low %v1027_v30, %v1028_v31  ;;  %v1525_v31 = vld [vmem:[%s3366_s1 + $0x3d8] sm:$0xff] }
 0x111   :  { %v1026_v35 = vld [vmem:[%s3366_s1 + $0x2f0] sm:$0xff] }
 0x112   :  { %992 = vmatprep.mubr.bf16.mxu1 %v279_v50  ;;  %789 = vmatprep.mubr.bf16.mxu0 %v564_v51  ;;  %v2174_v37 = vcombine.high %v1025_v34, %v1026_v35  ;;  %v1023_v38 = vld [vmem:[%s3366_s1 + $0x290] sm:$0xff]  ;;  %v2173_v40 = vcombine.low %v1025_v34, %v1026_v35  ;;  %v1509_v50 = vld [vmem:[%s3366_s1 + $0x1d8] sm:$0xff] }
 0x113   :  { %993 = vmatmul.mubr.bf16.vlgmr.msra.gmra.mxu1 %v278_v45  ;;  %790 = vmatmul.mubr.bf16.vlgmr.msra.gmra.mxu0 %v563_v52  ;;  %v1024_v39 = vld [vmem:[%s3366_s1 + $0x2b0] sm:$0xff]  ;;  %v1510_v51 = vld [vmem:[%s3366_s1 + $0x1f8] sm:$0xff] }
 0x114   :  { %1208 = vmatpush1.bf16.msra.mxu0 %v2165_v12  ;;  %1239 = vmatprep.mubr.bf16.mxu0 %v2625_v58  ;;  %v1003_v12 = vld [vmem:[%s3366_s1 + $0x10] sm:$0xff]  ;;  %v2172_v41 = vcombine.high %v1023_v38, %v1024_v39  ;;  %v2171_v44 = vcombine.low %v1023_v38, %v1024_v39  ;;  %v1524_v38 = vld [vmem:[%s3366_s1 + $0x3b8] sm:$0xff] }
 0x115   :  { %1209 = vmatprep.subr.bf16.mxu0 %v2164_v53  ;;  %v2152_v15 = vcombine.high %v1003_v12, %v1004_v13  ;;  %v2151_v20 = vcombine.low %v1003_v12, %v1004_v13  ;;  %v1021_v42 = vld [vmem:[%s3366_s1 + $0x250] sm:$0xff]  ;;  %v2230_v53 = vcombine.high %v1509_v50, %v1510_v51  ;;  %v1500_v12 = vld [vmem:[%s3366_s1 + $0xb8] sm:$0xff] }
 0x116   :  { %v1022_v43 = vld [vmem:[%s3366_s1 + $0x270] sm:$0xff] }
 0x117   :  { %v2170_v45 = vcombine.high %v1021_v42, %v1022_v43  ;;  %v1019_v46 = vld [vmem:[%s3366_s1 + $0x210] sm:$0xff]  ;;  %v2169_v48 = vcombine.low %v1021_v42, %v1022_v43  ;;  %v1521_v43 = vld [vmem:[%s3366_s1 + $0x358] sm:$0xff] }
 0x118   :  { %1210 = vmatpush1.bf16.msra.mxu0 %v2163_v56  ;;  %v2168_v49 = vcombine.high %v1019_v46, %v1020_v47  ;;  %v2167_v52 = vcombine.low %v1019_v46, %v1020_v47  ;;  %v2229_v56 = vcombine.low %v1509_v50, %v1510_v51  ;;  %v2386_v13 = vld [vmem:[%s3368_s3 + $0x254] ss:$8 sps:$4 sm:$0xff]   ;;  %v2384_v18 = vld [vmem:[%s3368_s3 + $0x250] ss:$8 sps:$4 sm:$0xff]  }
 0x119   :  { %1211 = vmatprep.subr.bf16.mxu0 %v2162_v57  ;;  %v2228_v57 = vcombine.high %v1507_v54, %v1508_v55  ;;  %v2392_v27 = vld [vmem:[%s3368_s3 + $0x234] ss:$8 sps:$4 sm:$0xff]   ;;  %v2390_v30 = vld [vmem:[%s3368_s3 + $0x230] ss:$8 sps:$4 sm:$0xff]  }
 0x11a   :  { %v2398_v39 = vld [vmem:[%s3368_s3 + $0x214] ss:$8 sps:$4 sm:$0xff]   ;;  %v2396_v42 = vld [vmem:[%s3368_s3 + $0x210] ss:$8 sps:$4 sm:$0xff]  }
 0x11b   :  { %v1520_v50 = vld [vmem:[%s3366_s1 + $0x338] sm:$0xff] }
 0x11c   :  { %1212 = vmatpush1.bf16.msra.mxu0 %v2161_v61  ;;  %v2227_v61 = vcombine.low %v1507_v54, %v1508_v55  ;;  %v2404_v51 = vld [vmem:[%s3368_s3 + $0x2f4] ss:$8 sps:$4 sm:$0xff]   ;;  %v2402_v54 = vld [vmem:[%s3368_s3 + $0x2f0] ss:$8 sps:$4 sm:$0xff]  }
 0x11d   :  { %1213 = vmatprep.subr.bf16.mxu0 %v2160_v62  ;;  %v2226_v62 = vcombine.high %v1505_v59, %v1506_v60  ;;  %v1517_v55 = vld [vmem:[%s3366_s1 + $0x2d8] sm:$0xff] }
 0x120   :  { %1214 = vmatpush1.bf16.msra.mxu0 %v2159_v1  ;;  %v2225_v1 = vcombine.low %v1505_v59, %v1506_v60 }
 0x121   :  { %1215 = vmatprep.subr.bf16.mxu0 %v2158_v2  ;;  %v2224_v2 = vcombine.high %v1503_v63, %v1504_v0  ;;  %v1516_v63 = vld [vmem:[%s3366_s1 + $0x2b8] sm:$0xff] }
 0x122   :  { %v2410_v0 = vld [vmem:[%s3368_s3 + $0x2d4] ss:$8 sps:$4 sm:$0xff]  }
 0x124   :  { %1216 = vmatpush1.bf16.msra.mxu0 %v2157_v5  ;;  %v2380_v5 = vld [vmem:[%s3368_s3 + $0x274] ss:$8 sps:$4 sm:$0xff]  }
 0x125   :  { %1217 = vmatprep.subr.bf16.mxu0 %v2156_v6  ;;  %v2383_v6 = vld [vmem:[%s3368_s3 + $0x264] ss:$8 sps:$4 sm:$0xff]   ;;  %1448 = vmatprep.subr.bf16.mxu1 %v2380_v5 }
 0x126   :  { %1449 = vmatpush1.bf16.msra.mxu1 %v2378_v4  ;;  %v1514_v4 = vld [vmem:[%s3366_s1 + $0x278] sm:$0xff]  ;;  %v2413_v5 = vld [vmem:[%s3368_s3 + $0x2c4] ss:$8 sps:$4 sm:$0xff]  }
 0x127   :  { %1450 = vmatprep.subr.bf16.mxu1 %v2383_v6 }
 0x128   :  { %1218 = vmatpush1.bf16.msra.mxu0 %v2155_v10  ;;  %v2381_v10 = vld [vmem:[%s3368_s3 + $0x260] ss:$8 sps:$4 sm:$0xff]  }
 0x129   :  { %1219 = vmatprep.subr.bf16.mxu0 %v2154_v11  ;;  %v1499_v11 = vld [vmem:[%s3366_s1 + $0x98] sm:$0xff] }
 0x12a   :  { %1451 = vmatpush1.bf16.msra.mxu1 %v2381_v10  ;;  %v2219_v22 = vcombine.low %v1499_v11, %v1500_v12  ;;  %v1511_v10 = vld [vmem:[%s3366_s1 + $0x218] sm:$0xff] }
 0x12b   :  { %1452 = vmatprep.subr.bf16.mxu1 %v2386_v13 }
 0x12c   :  { %1220 = vmatpush1.bf16.msra.mxu0 %v2153_v14 }
 0x12d   :  { %1221 = vmatprep.subr.bf16.mxu0 %v2152_v15  ;;  %v2220_v15 = vcombine.high %v1499_v11, %v1500_v12  ;;  %v1512_v11 = vld [vmem:[%s3366_s1 + $0x238] sm:$0xff] }
 0x12e   :  { %1453 = vmatpush1.bf16.msra.mxu1 %v2384_v18  ;;  %v2416_v12 = vld [vmem:[%s3368_s3 + $0x2b4] ss:$8 sps:$4 sm:$0xff]   ;;  %v2231_v18 = vcombine.low %v1511_v10, %v1512_v11 }
 0x130   :  { %1222 = vmatpush1.bf16.msra.mxu0 %v2151_v20  ;;  %v1498_v20 = vld [vmem:[%s3366_s1 + $0x78] sm:$0xff] }
 0x131   :  { %1223 = vmatprep.subr.bf16.mxu0 %v2182_v21  ;;  %v2389_v21 = vld [vmem:[%s3368_s3 + $0x244] ss:$8 sps:$4 sm:$0xff]   ;;  %v2218_v23 = vcombine.high %v1497_v19, %v1498_v20 }
 0x132   :  { %1454 = vmatprep.subr.bf16.mxu1 %v2389_v21  ;;  %v2422_v21 = vld [vmem:[%s3368_s3 + $0x294] ss:$8 sps:$4 sm:$0xff]  }
 0x134   :  { %1224 = vmatpush2.bf16.msra.mxu0 %v2181_v24  ;;  %v2387_v24 = vld [vmem:[%s3368_s3 + $0x240] ss:$8 sps:$4 sm:$0xff]  }
 0x135   :  { %1225 = vmatprep.subr.bf16.mxu0 %v2180_v25  ;;  %v1495_v25 = vld [vmem:[%s3366_s1 + $0x18] sm:$0xff]  ;;  %1455 = vmatpush1.bf16.msra.mxu1 %v2387_v24 }
 0x136   :  { %1456 = vmatprep.subr.bf16.mxu1 %v2392_v27  ;;  %v2215_v34 = vcombine.low %v1495_v25, %v1496_v26  ;;  %v2428_v24 = vld [vmem:[%s3368_s3 + $0x374] ss:$8 sps:$4 sm:$0xff]  }
 0x138   :  { %1226 = vmatpush2.bf16.msra.mxu0 %v2179_v28  ;;  %v2217_v28 = vcombine.low %v1497_v19, %v1498_v20  ;;  %v2419_v19 = vld [vmem:[%s3368_s3 + $0x2a4] ss:$8 sps:$4 sm:$0xff]   ;;  %v2417_v20 = vld [vmem:[%s3368_s3 + $0x2a0] ss:$8 sps:$4 sm:$0xff]  }
 0x139   :  { %1227 = vmatprep.subr.bf16.mxu0 %v2178_v29  ;;  %v2216_v29 = vcombine.high %v1495_v25, %v1496_v26  ;;  %1457 = vmatpush1.bf16.msra.mxu1 %v2390_v30 }
 0x13c   :  { %1228 = vmatpush2.bf16.msra.mxu0 %v2177_v32  ;;  %v1526_v32 = vld [vmem:[%s3366_s1 + $0x3f8] sm:$0xff] }
 0x13d   :  { %1229 = vmatprep.subr.bf16.mxu0 %v2176_v33  ;;  %v2395_v33 = vld [vmem:[%s3368_s3 + $0x224] ss:$8 sps:$4 sm:$0xff]   ;;  %v2246_v35 = vcombine.high %v1525_v31, %v1526_v32 }
 0x13e   :  { %1458 = vmatprep.subr.bf16.mxu1 %v2395_v33 }
 0x140   :  { %1230 = vmatpush2.bf16.msra.mxu0 %v2175_v36  ;;  %v2393_v36 = vld [vmem:[%s3368_s3 + $0x220] ss:$8 sps:$4 sm:$0xff]  }
 0x141   :  { %1231 = vmatprep.subr.bf16.mxu0 %v2174_v37  ;;  %v1523_v37 = vld [vmem:[%s3366_s1 + $0x398] sm:$0xff]  ;;  %1459 = vmatpush1.bf16.msra.mxu1 %v2393_v36 }
 0x142   :  { %1460 = vmatprep.subr.bf16.mxu1 %v2398_v39  ;;  %v2243_v46 = vcombine.low %v1523_v37, %v1524_v38 }
 0x144   :  { %1232 = vmatpush2.bf16.msra.mxu0 %v2173_v40  ;;  %v2245_v40 = vcombine.low %v1525_v31, %v1526_v32 }
 0x145   :  { %1233 = vmatprep.subr.bf16.mxu0 %v2172_v41  ;;  %v2244_v41 = vcombine.high %v1523_v37, %v1524_v38  ;;  %1461 = vmatpush1.bf16.msra.mxu1 %v2396_v42 }
 0x148   :  { %1234 = vmatpush2.bf16.msra.mxu0 %v2171_v44  ;;  %v1522_v44 = vld [vmem:[%s3366_s1 + $0x378] sm:$0xff] }
 0x149   :  { %1235 = vmatprep.subr.bf16.mxu0 %v2170_v45  ;;  %v2401_v45 = vld [vmem:[%s3368_s3 + $0x204] ss:$8 sps:$4 sm:$0xff]   ;;  %v2242_v47 = vcombine.high %v1521_v43, %v1522_v44 }
 0x14a   :  { %1462 = vmatprep.subr.bf16.mxu1 %v2401_v45  ;;  %v2426_v45 = vld [vmem:[%s3368_s3 + $0x370] ss:$8 sps:$4 sm:$0xff]  }
 0x14c   :  { %1236 = vmatpush2.bf16.msra.mxu0 %v2169_v48  ;;  %v2399_v48 = vld [vmem:[%s3368_s3 + $0x200] ss:$8 sps:$4 sm:$0xff]  }
 0x14d   :  { %1237 = vmatprep.subr.bf16.mxu0 %v2168_v49  ;;  %v1519_v49 = vld [vmem:[%s3366_s1 + $0x318] sm:$0xff]  ;;  %1463 = vmatpush1.bf16.msra.mxu1 %v2399_v48  ;;  %v2429_v48 = vld [vmem:[%s3368_s3 + $0x360] ss:$8 sps:$4 sm:$0xff]  }
 0x14e   :  { %1464 = vmatprep.subr.bf16.mxu1 %v2404_v51  ;;  %v2239_v59 = vcombine.low %v1519_v49, %v1520_v50  ;;  %v2437_v51 = vld [vmem:[%s3368_s3 + $0x344] ss:$8 sps:$4 sm:$0xff]  }
 0x150   :  { %1238 = vmatpush2.bf16.msra.mxu0 %v2167_v52  ;;  %v2241_v52 = vcombine.low %v1521_v43, %v1522_v44 }
 0x151   :  { %1699 = vmatprep.subr.bf16.mxu0 %v2230_v53  ;;  %v2240_v53 = vcombine.high %v1519_v49, %v1520_v50  ;;  %1465 = vmatpush2.bf16.msra.mxu1 %v2402_v54  ;;  %v2434_v49 = vld [vmem:[%s3368_s3 + $0x354] ss:$8 sps:$4 sm:$0xff]   ;;  %v2432_v50 = vld [vmem:[%s3368_s3 + $0x350] ss:$8 sps:$4 sm:$0xff]  }
 0x152   :  { %v2438_v54 = vld [vmem:[%s3368_s3 + $0x330] ss:$8 sps:$4 sm:$0xff]  }
 0x153   :  { %1240 = vmatmul.mubr.bf16.vlgmr.msra.gmra.mxu0 %v2746_v9 }
 0x154   :  { %1700 = vmatpush1.bf16.msra.mxu0 %v2229_v56  ;;  %1731 = vmatprep.mubr.bf16.mxu0 %v2625_v58  ;;  %v1502_v58 = vld [vmem:[%s3366_s1 + $0xf8] sm:$0xff] }
 0x155   :  { %1701 = vmatprep.subr.bf16.mxu0 %v2228_v57  ;;  %v2222_v8 = vcombine.high %v1501_v3, %v1502_v58  ;;  %v2221_v14 = vcombine.low %v1501_v3, %v1502_v58  ;;  %v1518_v56 = vld [vmem:[%s3366_s1 + $0x2f8] sm:$0xff]  ;;  %v2407_v57 = vld [vmem:[%s3368_s3 + $0x2e4] ss:$8 sps:$4 sm:$0xff]  }
 0x156   :  { %v2238_v60 = vcombine.high %v1517_v55, %v1518_v56  ;;  %1466 = vmatprep.subr.bf16.mxu1 %v2407_v57  ;;  %v2408_v3 = vld [vmem:[%s3368_s3 + $0x2d0] ss:$8 sps:$4 sm:$0xff]   ;;  %v2446_v57 = vld [vmem:[%s3368_s3 + $0x314] ss:$8 sps:$4 sm:$0xff]  }
 0x157   :  { %v1513_v58 = vld [vmem:[%s3366_s1 + $0x258] sm:$0xff] }
 0x158   :  { %1702 = vmatpush1.bf16.msra.mxu0 %v2227_v61  ;;  %v2405_v61 = vld [vmem:[%s3368_s3 + $0x2e0] ss:$8 sps:$4 sm:$0xff]   ;;  %v2233_v13 = vcombine.low %v1513_v58, %v1514_v4 }
 0x159   :  { %1703 = vmatprep.subr.bf16.mxu0 %v2226_v62  ;;  %v1515_v62 = vld [vmem:[%s3366_s1 + $0x298] sm:$0xff]  ;;  %1467 = vmatpush2.bf16.msra.mxu1 %v2405_v61  ;;  %v2447_v61 = vld [vmem:[%s3368_s3 + $0x300] ss:$8 sps:$4 sm:$0xff]  }
 0x15a   :  { %1468 = vmatprep.subr.bf16.mxu1 %v2410_v0  ;;  %v2235_v6 = vcombine.low %v1515_v62, %v1516_v63  ;;  %v2455_v0 = vld [vmem:[%s3368_s3 + $0x3e4] ss:$8 sps:$4 sm:$0xff]  }
 0x15c   :  { %1704 = vmatpush1.bf16.msra.mxu0 %v2225_v1  ;;  %v2237_v1 = vcombine.low %v1517_v55, %v1518_v56  ;;  %v2443_v55 = vld [vmem:[%s3368_s3 + $0x324] ss:$8 sps:$4 sm:$0xff]   ;;  %v2441_v56 = vld [vmem:[%s3368_s3 + $0x320] ss:$8 sps:$4 sm:$0xff]  }
 0x15d   :  { %1705 = vmatprep.subr.bf16.mxu0 %v2224_v2  ;;  %v2236_v2 = vcombine.high %v1515_v62, %v1516_v63  ;;  %1469 = vmatpush2.bf16.msra.mxu1 %v2408_v3  ;;  %v2452_v62 = vld [vmem:[%s3368_s3 + $0x3f4] ss:$8 sps:$4 sm:$0xff]   ;;  %v2450_v63 = vld [vmem:[%s3368_s3 + $0x3f0] ss:$8 sps:$4 sm:$0xff]  }
 0x15e   :  { %1470 = vmatprep.subr.bf16.mxu1 %v2413_v5  ;;  %v2456_v3 = vld [vmem:[%s3368_s3 + $0x3d0] ss:$8 sps:$4 sm:$0xff]   ;;  %v2464_v5 = vld [vmem:[%s3368_s3 + $0x3b4] ss:$8 sps:$4 sm:$0xff]  }
 0x160   :  { %1706 = vmatpush1.bf16.msra.mxu0 %v2223_v7  ;;  %v2234_v7 = vcombine.high %v1513_v58, %v1514_v4  ;;  %v2461_v58 = vld [vmem:[%s3368_s3 + $0x3c4] ss:$8 sps:$4 sm:$0xff]   ;;  %v2459_v4 = vld [vmem:[%s3368_s3 + $0x3c0] ss:$8 sps:$4 sm:$0xff]  }
 0x161   :  { %1707 = vmatprep.subr.bf16.mxu0 %v2222_v8  ;;  %v2411_v8 = vld [vmem:[%s3368_s3 + $0x2c0] ss:$8 sps:$4 sm:$0xff]  }
 0x162   :  { %1471 = vmatpush2.bf16.msra.mxu1 %v2411_v8  ;;  %v1527_v8 = vld [vmem:[%s3367_s2 + $0x6] sm:$0x3] }
 0x163   :  { %1472 = vmatprep.subr.bf16.mxu1 %v2416_v12  ;;  %v2470_v12 = vld [vmem:[%s3368_s3 + $0x394] ss:$8 sps:$4 sm:$0xff]  }
 0x164   :  { %1708 = vmatpush1.bf16.msra.mxu0 %v2221_v14  ;;  %v2232_v14 = vcombine.high %v1511_v10, %v1512_v11  ;;  %v2465_v10 = vld [vmem:[%s3368_s3 + $0x3a0] ss:$8 sps:$4 sm:$0xff]  }
 0x165   :  { %1709 = vmatprep.subr.bf16.mxu0 %v2220_v15  ;;  %v2414_v15 = vld [vmem:[%s3368_s3 + $0x2b0] ss:$8 sps:$4 sm:$0xff]  }
 0x166   :  { %1473 = vmatpush2.bf16.msra.mxu1 %v2414_v15 }
 0x167   :  { %1474 = vmatprep.subr.bf16.mxu1 %v2419_v19 }
 0x168   :  { %1710 = vmatpush1.bf16.msra.mxu0 %v2219_v22  ;;  %v2420_v22 = vld [vmem:[%s3368_s3 + $0x290] ss:$8 sps:$4 sm:$0xff]  }
 0x169   :  { %1711 = vmatprep.subr.bf16.mxu0 %v2218_v23  ;;  %v2423_v23 = vld [vmem:[%s3368_s3 + $0x280] ss:$8 sps:$4 sm:$0xff]  }
 0x16a   :  { %1475 = vmatpush2.bf16.msra.mxu1 %v2417_v20  ;;  %v2473_v20 = vld [vmem:[%s3368_s3 + $0x384] ss:$8 sps:$4 sm:$0xff]  }
 0x16b   :  { %1476 = vmatprep.subr.bf16.mxu1 %v2422_v21 }
 0x16c   :  { %1712 = vmatpush1.bf16.msra.mxu0 %v2217_v28 }
 0x16d   :  { %1713 = vmatprep.subr.bf16.mxu0 %v2216_v29  ;;  %v1035_v29 = vld [vmem:[%s3367_s2 + $0x4] sm:$0x3] }
 0x16e   :  { %1477 = vmatpush2.bf16.msra.mxu1 %v2420_v22  ;;  %v1044_v31 = vrot.slane %v1035_v29, %v2944_v17  ;;  %v1040_v32 = vrot.slane %v1035_v29, %v2942_v16  ;;  %v2471_v29 = vld [vmem:[%s3368_s3 + $0x380] ss:$8 sps:$4 sm:$0xff]  }
 0x170   :  { %1714 = vmatpush1.bf16.msra.mxu0 %v2215_v34 }
 0x171   :  { %1715 = vmatprep.subr.bf16.mxu0 %v2246_v35 }
 0x174   :  { %1716 = vmatpush2.bf16.msra.mxu0 %v2245_v40 }
 0x175   :  { %1717 = vmatprep.subr.bf16.mxu0 %v2244_v41 }
 0x178   :  { %1718 = vmatpush2.bf16.msra.mxu0 %v2243_v46 }
 0x179   :  { %1719 = vmatprep.subr.bf16.mxu0 %v2242_v47  ;;  %v2431_v47 = vld [vmem:[%s3368_s3 + $0x364] ss:$8 sps:$4 sm:$0xff]  }
 0x17c   :  { %1720 = vmatpush2.bf16.msra.mxu0 %v2241_v52  ;;  %v2435_v52 = vld [vmem:[%s3368_s3 + $0x340] ss:$8 sps:$4 sm:$0xff]  }
 0x17d   :  { %1721 = vmatprep.subr.bf16.mxu0 %v2240_v53  ;;  %v2440_v53 = vld [vmem:[%s3368_s3 + $0x334] ss:$8 sps:$4 sm:$0xff]  }
 0x180   :  { %1722 = vmatpush2.bf16.msra.mxu0 %v2239_v59  ;;  %v2444_v59 = vld [vmem:[%s3368_s3 + $0x310] ss:$8 sps:$4 sm:$0xff]  }
 0x181   :  { %1723 = vmatprep.subr.bf16.mxu0 %v2238_v60  ;;  %v2449_v60 = vld [vmem:[%s3368_s3 + $0x304] ss:$8 sps:$4 sm:$0xff]  }
 0x184   :  { %1724 = vmatpush2.bf16.msra.mxu0 %v2237_v1  ;;  %v2453_v1 = vld [vmem:[%s3368_s3 + $0x3e0] ss:$8 sps:$4 sm:$0xff]  }
 0x185   :  { %1725 = vmatprep.subr.bf16.mxu0 %v2236_v2  ;;  %v2458_v2 = vld [vmem:[%s3368_s3 + $0x3d4] ss:$8 sps:$4 sm:$0xff]  }
 0x188   :  { %1726 = vmatpush2.bf16.msra.mxu0 %v2235_v6  ;;  %v2462_v6 = vld [vmem:[%s3368_s3 + $0x3b0] ss:$8 sps:$4 sm:$0xff]  }
 0x189   :  { %1727 = vmatprep.subr.bf16.mxu0 %v2234_v7  ;;  %v2467_v7 = vld [vmem:[%s3368_s3 + $0x3a4] ss:$8 sps:$4 sm:$0xff]  }
 0x18c   :  { %1728 = vmatpush2.bf16.msra.mxu0 %v2233_v13  ;;  %v1536_v13 = vrot.slane %v1527_v8, %v2944_v17 }
 0x18d   :  { %1729 = vmatprep.subr.bf16.mxu0 %v2232_v14  ;;  %v1532_v14 = vrot.slane %v1527_v8, %v2942_v16 }
 0x190   :  { %1730 = vmatpush2.bf16.msra.mxu0 %v2231_v18  ;;  %v2468_v18 = vld [vmem:[%s3368_s3 + $0x390] ss:$8 sps:$4 sm:$0xff]  }
 0x193   :  { %1732 = vmatmul.mubr.bf16.vlgmr.msra.gmra.mxu0 %v2746_v9  ;;  %v2425_v9 = vld [vmem:[%s3368_s3 + $0x284] ss:$8 sps:$4 sm:$0xff]   ;;  %s2496_s3 = smov [#allocation2]  }
 0x194   :  { %1478 = vmatprep.subr.bf16.mxu1 %v2425_v9 }
 0x195   :  { %1479 = vmatpush2.bf16.msra.mxu1 %v2423_v23 }
 0x196   :  { %1940 = vmatprep.subr.bf16.mxu1 %v2428_v24 }
 0x1d3   :  { %v3242_v25 = vpop.f32.mrf.mxu0 }
 0x1d5   :  { %v3244_v26 = vpop.f32.mrf.mxu0 }
 0x1d7   :  { %v3246_v27 = vpop.f32.mrf.mxu0 }
 0x1d9   :  { %v3248_v28 = vpop.f32.mrf.mxu0 }
 0x213   :  { %v1241_v30 = vpop.f32.mrf.mxu0 }
 0x214   :  { %v1242_v37 = vadd.f32 %v1241_v30, %v1040_v32 }
 0x215   :  { %v1243_v33 = vpop.f32.mrf.mxu0 }
 0x216   :  { %v1244_v35 = vadd.f32 %v1243_v33, %v1044_v31  ;;  %v1250_v43 = vmax.f32 %v1242_v37, 0.0 }
 0x217   :  { %v1245_v34 = vpop.f32.mrf.mxu0 }
 0x218   :  { %v1246_v36 = vadd.f32 %v1245_v34, %v1040_v32  ;;  %v1251_v41 = vmax.f32 %v1244_v35, 0.0 }
 0x219   :  { %v1247_v38 = vpop.f32.mrf.mxu0 }
 0x21a   :  { %v1248_v39 = vadd.f32 %v1247_v38, %v1044_v31  ;;  %v1252_v40 = vmax.f32 %v1246_v36, 0.0  ;;  %v994_v36 = vpop.f32.mrf.mxu1 }
 0x21c   :  { %v1253_v42 = vmax.f32 %v1248_v39, 0.0  ;;  %v1254_v46 = vpack.c.bf16 %v1252_v40, %v1250_v43  ;;  %v996_v37 = vpop.f32.mrf.mxu1  ;;  %v1987_v43 = vld [vmem:[%s3369_s4] sm:$0x3]  ;;  %s2012_s4 = sshll.u32 %s2496_s3, 4  ;;  %s2013_s4 = int_to_ptr.vmem [resolvable:$true] %s2012_s4 }
 0x21d   :  { %s2474_s1 = scalar_lea.vmem %s2013_s4, 512  ;;  %p2479_p1 = scmp.lt.s32.totalorder %s2013_s4, %s2013_s4 }
 0x21e   :  { %v1255_v44 = vpack.c.bf16 %v1253_v42, %v1251_v41  ;;  %v998_v38 = vpop.f32.mrf.mxu1  ;;  %p2475_p0 = scmp.ne.s32.totalorder %s2013_s4, %s2474_s1  ;;  %p2480_p2 = scmp.lt.s32.totalorder %s2474_s1, %s2474_s1 }
 0x220   :  { %1480 = vmatprep.mubr.bf16.mxu1 %v1255_v44  ;;  %v1000_v39 = vpop.f32.mrf.mxu1  ;;  %v995_v44 = vadd.f32 %v994_v36, %v3242_v25  ;;  %p2481_p3 = por %p2480_p2, %p2479_p1 }
 0x221   :  { %1481 = vmatmul.mubr.bf16.vlgmr.msra.gmra.mxu1 %v1254_v46  ;;  %v997_v46 = vadd.f32 %v996_v37, %v3244_v26 }
 0x222   :  { %1941 = vmatpush1.bf16.msra.mxu1 %v2426_v45  ;;  %p2482_p4 = pnand %p2481_p3, %p2475_p0 }
 0x223   :  { %1942 = vmatprep.subr.bf16.mxu1 %v2431_v47 }
 0x226   :  { %1943 = vmatpush1.bf16.msra.mxu1 %v2429_v48  ;;  %v1992_v48 = vrot.slane %v1987_v43, %v2942_v16 }
 0x227   :  { %1944 = vmatprep.subr.bf16.mxu1 %v2434_v49 }
 0x22a   :  { %1945 = vmatpush1.bf16.msra.mxu1 %v2432_v50  ;;  %v999_v50 = vadd.f32 %v998_v38, %v3246_v27 }
 0x22b   :  { %1946 = vmatprep.subr.bf16.mxu1 %v2437_v51 }
 0x22e   :  { %1947 = vmatpush1.bf16.msra.mxu1 %v2435_v52 }
 0x22f   :  { %1948 = vmatprep.subr.bf16.mxu1 %v2440_v53  ;;  %v1996_v53 = vrot.slane %v1987_v43, %v2944_v17 }
 0x232   :  { %1949 = vmatpush1.bf16.msra.mxu1 %v2438_v54 }
 0x233   :  { %1950 = vmatprep.subr.bf16.mxu1 %v2443_v55  ;;  %v1001_v55 = vadd.f32 %v1000_v39, %v3248_v28 }
 0x236   :  { %1951 = vmatpush1.bf16.msra.mxu1 %v2441_v56 }
 0x237   :  { %1952 = vmatprep.subr.bf16.mxu1 %v2446_v57 }
 0x23a   :  { %1953 = vmatpush1.bf16.msra.mxu1 %v2444_v59 }
 0x23b   :  { %1954 = vmatprep.subr.bf16.mxu1 %v2449_v60 }
 0x23e   :  { %1955 = vmatpush1.bf16.msra.mxu1 %v2447_v61 }
 0x23f   :  { %1956 = vmatprep.subr.bf16.mxu1 %v2452_v62 }
 0x242   :  { %1957 = vmatpush2.bf16.msra.mxu1 %v2450_v63 }
 0x243   :  { %1958 = vmatprep.subr.bf16.mxu1 %v2455_v0 }
 0x246   :  { %1959 = vmatpush2.bf16.msra.mxu1 %v2453_v1 }
 0x247   :  { %1960 = vmatprep.subr.bf16.mxu1 %v2458_v2 }
 0x24a   :  { %1961 = vmatpush2.bf16.msra.mxu1 %v2456_v3 }
 0x24b   :  { %1962 = vmatprep.subr.bf16.mxu1 %v2461_v58 }
 0x24e   :  { %1963 = vmatpush2.bf16.msra.mxu1 %v2459_v4 }
 0x24f   :  { %1964 = vmatprep.subr.bf16.mxu1 %v2464_v5 }
 0x252   :  { %1965 = vmatpush2.bf16.msra.mxu1 %v2462_v6 }
 0x253   :  { %v1733_v11 = vpop.f32.mrf.mxu0  ;;  %1966 = vmatprep.subr.bf16.mxu1 %v2467_v7 }
 0x254   :  { %v1734_v9 = vadd.f32 %v1733_v11, %v1532_v14 }
 0x255   :  { %v1735_v15 = vpop.f32.mrf.mxu0 }
 0x256   :  { %1967 = vmatpush2.bf16.msra.mxu1 %v2465_v10  ;;  %v1736_v21 = vadd.f32 %v1735_v15, %v1536_v13  ;;  %v1742_v33 = vmax.f32 %v1734_v9, 0.0 }
 0x257   :  { %v1737_v19 = vpop.f32.mrf.mxu0  ;;  %1968 = vmatprep.subr.bf16.mxu1 %v2470_v12 }
 0x258   :  { %v1738_v22 = vadd.f32 %v1737_v19, %v1532_v14  ;;  %v1743_v31 = vmax.f32 %v1736_v21, 0.0 }
 0x259   :  { %v1739_v23 = vpop.f32.mrf.mxu0 }
 0x25a   :  { %v1740_v24 = vadd.f32 %v1739_v23, %v1536_v13  ;;  %1969 = vmatpush2.bf16.msra.mxu1 %v2468_v18  ;;  %v1744_v30 = vmax.f32 %v1738_v22, 0.0 }
 0x25b   :  { %1970 = vmatprep.subr.bf16.mxu1 %v2473_v20 }
 0x25c   :  { %v1745_v32 = vmax.f32 %v1740_v24, 0.0  ;;  %v1746_v35 = vpack.c.bf16 %v1744_v30, %v1742_v33 }
 0x25e   :  { %v1747_v34 = vpack.c.bf16 %v1745_v32, %v1743_v31  ;;  %1971 = vmatpush2.bf16.msra.mxu1 %v2471_v29 }
 0x260   :  { %1972 = vmatprep.mubr.bf16.mxu1 %v1747_v34 }
 0x261   :  { %1973 = vmatmul.mubr.bf16.vlgmr.msra.gmra.mxu1 %v1746_v35 }
 0x2e1   :  { %v1482_v40 = vpop.f32.mrf.mxu1 }
 0x2e2   :  { %v1491_v47 = vadd.f32 %v1482_v40, %v995_v44 }
 0x2e3   :  { %v1484_v41 = vpop.f32.mrf.mxu1 }
 0x2e4   :  { %v1492_v51 = vadd.f32 %v1484_v41, %v997_v46 }
 0x2e5   :  { %v1486_v42 = vpop.f32.mrf.mxu1 }
 0x2e6   :  { %v1493_v56 = vadd.f32 %v1486_v42, %v999_v50 }
 0x2e7   :  { %v1488_v45 = vpop.f32.mrf.mxu1 }
 0x2e8   :  { %v1494_v60 = vadd.f32 %v1488_v45, %v1001_v55 }
 0x321   :  { %v1974_v49 = vpop.f32.mrf.mxu1 }
 0x322   :  { %v1983_v52 = vadd.f32 %v1974_v49, %v1491_v47 }
 0x323   :  { %v1976_v54 = vpop.f32.mrf.mxu1 }
 0x324   :  { %v1999_v57 = vadd.f32 %v1992_v48, %v1983_v52  ;;  %v1984_v59 = vadd.f32 %v1976_v54, %v1492_v51 }
 0x325   :  { %v1978_v25 = vpop.f32.mrf.mxu1 }
 0x326   :  { %2003 = vst [vmem:[#allocation2] sm:$0xff] %v1999_v57  ;;  %v2000_v26 = vadd.f32 %v1996_v53, %v1984_v59  ;;  %v1985_v61 = vadd.f32 %v1978_v25, %v1493_v56 }
 0x327   :  { %v1980_v16 = vpop.f32.mrf.mxu1 }
 0x328   :  { %2004 = vst [vmem:[#allocation2 + $0x8] sm:$0xff] %v2000_v26  ;;  %v2001_v27 = vadd.f32 %v1992_v48, %v1985_v61  ;;  %v1986_v62 = vadd.f32 %v1980_v16, %v1494_v60 }
 0x32a   :  { %2005 = vst [vmem:[#allocation2 + $0x10] sm:$0xff] %v2001_v27  ;;  %v2002_v17 = vadd.f32 %v1996_v53, %v1986_v62 }
 0x32c   :  { %2006 = vst [vmem:[#allocation2 + $0x18] sm:$0xff] %v2002_v17 }
 0x32d   :  { %2485 = shalt.err (!%p2482_p4)
}
 0x32e   :  { %s2497_s29 = smov 256   ;;  %s2498_s30 = smov 16  }
 0x32f   :  { %2018 = dma.vmem_to_hbm [thread:$0]  %s2013_s4, 512, %s3370_s5, [#allocation3], %s2497_s29, %s2497_s29, %s2498_s30  }
 0x330   :  { %2494 = dma.done.wait [#allocation3], 512  }
 0x331   :  { %2495 = vsyncadd [#allocation3], 4294966784 }
 0x332   :  { %2022 = vsyncpa [#allocation3], 1 }

</bundles_post_ra>
